<compile_context>
chip_gen: v6e
topology: v6e:2x2x1
jax: 0.10.0
libtpu: 0.0.40
codegen_flags: <defaults>
</compile_context>

<pallas_src>
import functools

import jax
import jax.numpy as jnp
from jax.experimental import pallas as pl
from jax.experimental.pallas import tpu as pltpu


def ann_simple_kernel(x_ref, w1_ref, b1_ref, w2_ref, b2_ref, o_ref):
    # ---- Hidden layer: (TB, in) @ (in, 30) + (1, 30) on the MXU (bf16 in, f32 acc)
    x = x_ref[...].astype(jnp.bfloat16)
    w1 = w1_ref[...].astype(jnp.bfloat16)
    h = jnp.dot(x, w1, preferred_element_type=jnp.float32)
    h = h + b1_ref[...]
    # LeakyReLU (PyTorch default negative_slope = 0.01)
    h = jnp.where(h > 0, h, 0.01 * h)
    # ---- Output layer (N=1): VPU multiply + XLU lane-reduce instead of an MXU
    #      pass that would use 1 of 128/256 result columns.
    out = jnp.sum(h * w2_ref[...], axis=-1, keepdims=True) + b2_ref[...]
    # NOTE: (TB, 1) output is not lane-dense; output bytes are tiny here so the
    # masked-store cost is negligible (secondary lever per perf review).
    o_ref[...] = out.astype(o_ref.dtype)


@functools.partial(jax.jit, static_argnames=("tb",))
def ann_simple_forward(x, w1, b1, w2, b2, *, tb=2048):
    """x: (B, in), w1: (in, 30), b1: (1, 30), w2: (1, 30), b2: (1, 1)."""
    B, in_features = x.shape
    hidden = w1.shape[1]

    # Batch tile: multiple of 8 sublanes, capped at `tb`.  For tiny B this
    # clamps to a single grid step (no per-step overhead); for large B it
    # gives a pipelined grid with ~(TB*in*2B) bf16-equivalent tiles well under
    # even v7x's 64 MiB VMEM (double-buffered).
    TB = min(tb, max(8, ((B + 7) // 8) * 8))
    B_pad = pl.cdiv(B, TB) * TB
    if B_pad != B:
        x = jnp.pad(x, ((0, B_pad - B), (0, 0)))

    out = pl.pallas_call(
        ann_simple_kernel,
        out_shape=jax.ShapeDtypeStruct((B_pad, 1), jnp.float32),
        grid=(B_pad // TB,),
        in_specs=[
            pl.BlockSpec((TB, in_features), lambda i: (i, 0)),      # x: tiled over batch
            pl.BlockSpec((in_features, hidden), lambda i: (0, 0)),  # w1: resident
            pl.BlockSpec((1, hidden), lambda i: (0, 0)),            # b1: resident
            pl.BlockSpec((1, hidden), lambda i: (0, 0)),            # w2 row: resident
            pl.BlockSpec((1, 1), lambda i: (0, 0)),                 # b2: resident
        ],
        out_specs=pl.BlockSpec((TB, 1), lambda i: (i, 0)),
        compiler_params=pltpu.CompilerParams(
            # batch axis is embarrassingly parallel -> shard across v7x's 2 TCs
            dimension_semantics=("parallel",),
            # headroom sized against v7x's 64 MiB physical VMEM (not v5e/v6e's 128)
            vmem_limit_bytes=48 * 1024 * 1024,
        ),
    )(x, w1, b1, w2, b2)

    # matches torch's x.reshape(-1); drop any batch padding
    return out.reshape(-1)[:B]


if __name__ == "__main__":
    # Small, module-consistent shapes: batch=8 samples, input_size=32 features.
    B = 8
    input_size = 32
    hidden = 30

    key = jax.random.PRNGKey(0)
    kx, kw1, kb1, kw2, kb2 = jax.random.split(key, 5)

    x = jax.random.normal(kx, (B, input_size), dtype=jnp.float32)

    # Deterministic parameter init (uniform, roughly torch Linear's scale).
    bound1 = 1.0 / (input_size ** 0.5)
    w1 = jax.random.uniform(kw1, (input_size, hidden), jnp.float32, -bound1, bound1)
    b1 = jax.random.uniform(kb1, (1, hidden), jnp.float32, -bound1, bound1)

    bound2 = 1.0 / (hidden ** 0.5)
    w2 = jax.random.uniform(kw2, (1, hidden), jnp.float32, -bound2, bound2)  # (out=1, in=30) row
    b2 = jax.random.uniform(kb2, (1, 1), jnp.float32, -bound2, bound2)

    y = ann_simple_forward(x, w1, b1, w2, b2)
    jax.block_until_ready(y)
    assert y.shape == (B,)

    # Reference with the same bf16-input / f32-accumulation math (tight check).
    h_ref = jnp.dot(x.astype(jnp.bfloat16), w1.astype(jnp.bfloat16),
                    preferred_element_type=jnp.float32) + b1
    h_ref = jnp.where(h_ref > 0, h_ref, 0.01 * h_ref)
    y_ref = (jnp.sum(h_ref * w2, axis=-1, keepdims=True) + b2).reshape(-1)
    assert jnp.allclose(y, y_ref, atol=2e-3, rtol=2e-3), float(jnp.max(jnp.abs(y - y_ref)))

    # Sanity check against the original full-f32 module semantics (looser, bf16 rounding).
    h32 = x @ w1 + b1
    h32 = jnp.where(h32 > 0, h32, 0.01 * h32)
    y32 = (jnp.sum(h32 * w2, axis=-1, keepdims=True) + b2).reshape(-1)
    assert jnp.allclose(y, y32, atol=5e-2, rtol=5e-2), float(jnp.max(jnp.abs(y - y32)))

    print("KERNEL_OK")
</pallas_src>

<mosaic_0001>
module attributes {stable_mosaic.version = 11 : i64} {
  func.func @ann_simple_kernel(%arg0: i32, %arg1: memref<8x32xf32, #tpu.memory_space<vmem>>, %arg2: memref<32x30xf32, #tpu.memory_space<vmem>>, %arg3: memref<1x30xf32, #tpu.memory_space<vmem>>, %arg4: memref<1x30xf32, #tpu.memory_space<vmem>>, %arg5: memref<1x1xf32, #tpu.memory_space<vmem>>, %arg6: memref<8x1xf32, #tpu.memory_space<vmem>>) attributes {dimension_semantics = [#tpu.dimension_semantics<parallel>], iteration_bounds = array<i64: 1>, scalar_prefetch = 0 : i64, scratch_operands = 0 : i64, tpu.core_type = #tpu.core_type<tc>, window_params = [{transform_indices = @transform_0, window_bounds = array<i64: 8, 32>}, {pipeline_mode = #tpu.pipeline_mode<synchronous>, transform_indices = @transform_1, window_bounds = array<i64: 32, 30>}, {pipeline_mode = #tpu.pipeline_mode<synchronous>, transform_indices = @transform_2, window_bounds = array<i64: 1, 30>}, {pipeline_mode = #tpu.pipeline_mode<synchronous>, transform_indices = @transform_3, window_bounds = array<i64: 1, 30>}, {pipeline_mode = #tpu.pipeline_mode<synchronous>, transform_indices = @transform_4, window_bounds = array<i64: 1, 1>}, {transform_indices = @transform_5, window_bounds = array<i64: 8, 1>}]} {
    %c0 = arith.constant 0 : index
    %c0_0 = arith.constant 0 : index
    %0 = vector.load %arg1[%c0, %c0_0] : memref<8x32xf32, #tpu.memory_space<vmem>>, vector<8x32xf32>
    %1 = arith.truncf %0 : vector<8x32xf32> to vector<8x32xbf16>
    %c0_1 = arith.constant 0 : index
    %c0_2 = arith.constant 0 : index
    %2 = vector.load %arg2[%c0_1, %c0_2] : memref<32x30xf32, #tpu.memory_space<vmem>>, vector<32x30xf32>
    %3 = arith.truncf %2 : vector<32x30xf32> to vector<32x30xbf16>
    %cst = arith.constant dense<0.000000e+00> : vector<8x30xf32>
    %4 = tpu.matmul %1, %3, %cst {dimension_numbers = #tpu.dot_dimension_numbers<[1], [0], [0], [1], [0, 0, 1, 1], [], []>} : vector<8x32xbf16>, vector<32x30xbf16>, vector<8x30xf32> -> vector<8x30xf32>
    %c0_3 = arith.constant 0 : index
    %c0_4 = arith.constant 0 : index
    %5 = vector.load %arg3[%c0_3, %c0_4] : memref<1x30xf32, #tpu.memory_space<vmem>>, vector<1x30xf32>
    %6 = vector.broadcast %5 : vector<1x30xf32> to vector<8x30xf32>
    %7 = arith.addf %4, %6 : vector<8x30xf32>
    %cst_5 = arith.constant 0.000000e+00 : f32
    %8 = vector.broadcast %cst_5 : f32 to vector<8x30xf32>
    %9 = arith.cmpf ogt, %7, %8 : vector<8x30xf32>
    %cst_6 = arith.constant 0.00999999977 : f32
    %10 = vector.broadcast %cst_6 : f32 to vector<8x30xf32>
    %11 = arith.mulf %10, %7 : vector<8x30xf32>
    %12 = arith.select %9, %7, %11 : vector<8x30xi1>, vector<8x30xf32>
    %c0_7 = arith.constant 0 : index
    %c0_8 = arith.constant 0 : index
    %13 = vector.load %arg4[%c0_7, %c0_8] : memref<1x30xf32, #tpu.memory_space<vmem>>, vector<1x30xf32>
    %14 = vector.broadcast %13 : vector<1x30xf32> to vector<8x30xf32>
    %15 = arith.mulf %12, %14 : vector<8x30xf32>
    %cst_9 = arith.constant dense<0.000000e+00> : vector<8xf32>
    %16 = vector.multi_reduction <add>, %15, %cst_9 [1] : vector<8x30xf32> to vector<8xf32>
    %17 = vector.shape_cast %16 : vector<8xf32> to vector<8x1xf32>
    %c0_10 = arith.constant 0 : index
    %c0_11 = arith.constant 0 : index
    %18 = vector.load %arg5[%c0_10, %c0_11] : memref<1x1xf32, #tpu.memory_space<vmem>>, vector<1x1xf32>
    %19 = vector.broadcast %18 : vector<1x1xf32> to vector<8x1xf32>
    %20 = arith.addf %17, %19 : vector<8x1xf32>
    %c0_12 = arith.constant 0 : index
    %c0_13 = arith.constant 0 : index
    %21 = vector.load %arg6[%c0_12, %c0_13] : memref<8x1xf32, #tpu.memory_space<vmem>>, vector<8x1xf32>
    tpu.vector_store %arg6[%c0_12, %c0_13], %20 {strides = array<i32>} : memref<8x1xf32, #tpu.memory_space<vmem>>, vector<8x1xf32>,
    return
  }
  func.func @transform_0(%arg0: i32) -> (i32, i32) {
    %c0_i32 = arith.constant 0 : i32
    %c0_i32_0 = arith.constant 0 : i32
    return %arg0, %c0_i32 : i32, i32
  }
  func.func @transform_1(%arg0: i32) -> (i32, i32) {
    %c0_i32 = arith.constant 0 : i32
    %c0_i32_0 = arith.constant 0 : i32
    %c0_i32_1 = arith.constant 0 : i32
    return %c0_i32, %c0_i32_0 : i32, i32
  }
  func.func @transform_2(%arg0: i32) -> (i32, i32) {
    %c0_i32 = arith.constant 0 : i32
    %c0_i32_0 = arith.constant 0 : i32
    %c0_i32_1 = arith.constant 0 : i32
    return %c0_i32, %c0_i32_0 : i32, i32
  }
  func.func @transform_3(%arg0: i32) -> (i32, i32) {
    %c0_i32 = arith.constant 0 : i32
    %c0_i32_0 = arith.constant 0 : i32
    %c0_i32_1 = arith.constant 0 : i32
    return %c0_i32, %c0_i32_0 : i32, i32
  }
  func.func @transform_4(%arg0: i32) -> (i32, i32) {
    %c0_i32 = arith.constant 0 : i32
    %c0_i32_0 = arith.constant 0 : i32
    %c0_i32_1 = arith.constant 0 : i32
    return %c0_i32, %c0_i32_0 : i32, i32
  }
  func.func @transform_5(%arg0: i32) -> (i32, i32) {
    %c0_i32 = arith.constant 0 : i32
    %c0_i32_0 = arith.constant 0 : i32
    return %arg0, %c0_i32 : i32, i32
  }
}

</mosaic_0001>

<bundles_post_ra>
// kernel: ann_simple_forward.1
= control target key start
LH: loop header
LB: loop body
LE: loop exit
PB: predicated region body
PF: predicated region fallthrough
CT: control target
= control target key end

     0   :  { %s258_s0 = inlined_call_operand.hbm [shape: f32[8,32], index: 0, kind: input, shape index: {}]   ;;  %s259_s1 = inlined_call_operand.hbm [shape: f32[32,30], index: 1, kind: input, shape index: {}]   ;;  %s260_s2 = inlined_call_operand.vmem [shape: f32[1,30], index: 2, kind: input, shape index: {}]   ;;  %s261_s3 = inlined_call_operand.vmem [shape: f32[1,30], index: 3, kind: input, shape index: {}]   ;;  %s262_s4 = inlined_call_operand.<no memory space> [shape: f32[1,1], index: 4, kind: input, shape index: {}]   ;;  %s263_s5 = inlined_call_operand.vmem [shape: f32[8,1], index: 5, kind: output, shape index: {}]  }
   0x1   :  { %v10_v0 = vstv %s262_s4 }
   0x2   :  { %11 = vst [vmem:[#allocation2] sm:$0x1] %v10_v0 }
   0x3   :  { %12 = vsyncpa [#allocation4], 0 }
   0x4   :  { %13 = vsyncpa [#allocation6], 0  ;;  %s204_s20 = smov [#allocation3]   ;;  %s205_s22 = smov [#allocation5]  }
   0x5   :  { %s20_s21 = sshll.u32 %s204_s20, 4  ;;  %s29_s23 = sshll.u32 %s205_s22, 4  ;;  %s21_s21 = int_to_ptr.vmem [resolvable:$true] %s20_s21  ;;  %s30_s23 = int_to_ptr.vmem [resolvable:$true] %s29_s23 }
   0x6   :  { %s168_s24 = scalar_lea.vmem %s21_s21, 128  ;;  %p173_p1 = scmp.lt.s32.totalorder %s21_s21, %s21_s21 }
   0x7   :  { %p169_p0 = scmp.ne.s32.totalorder %s21_s21, %s168_s24  ;;  %p174_p2 = scmp.lt.s32.totalorder %s168_s24, %s168_s24 }
   0x9   :  { %p175_p3 = por %p174_p2, %p173_p1 }
   0xb   :  { %p176_p4 = pnand %p175_p3, %p169_p0 }
   0xd   :  { %179 = shalt.err (!%p176_p4)
}
   0xe   :  { %23 = dma.hbm_to_vmem [thread:$0]  %s258_s0, 128, %s21_s21, [#allocation4]  }
   0xf   :  { %s188_s4 = scalar_lea.vmem %s30_s23, 512  ;;  %p193_p6 = scmp.lt.s32.totalorder %s30_s23, %s30_s23 }
  0x10   :  { %p189_p5 = scmp.ne.s32.totalorder %s30_s23, %s188_s4  ;;  %p194_p7 = scmp.lt.s32.totalorder %s188_s4, %s188_s4 }
  0x12   :  { %p195_p8 = por %p194_p7, %p193_p6 }
  0x14   :  { %p196_p9 = pnand %p195_p8, %p189_p5 }
  0x16   :  { %199 = shalt.err (!%p196_p9)
}
  0x17   :  { %s206_s27 = smov 128   ;;  %s207_s28 = smov 8  }
  0x18   :  { %35 = dma.hbm_to_vmem [thread:$0]  %s259_s1, 512, %s30_s23, [#allocation6], %s206_s27, %s206_s27, %s207_s28  }
  0x19   :  { %200 = dma.done.wait [#allocation4], 128  }
  0x1a   :  { %201 = vsyncadd [#allocation4], 4294967168 }
  0x1b   :  { %202 = dma.done.wait [#allocation6], 512  }
  0x1c   :  { %203 = vsyncadd [#allocation6], 4294966784  ;;  %v208_v1 = vmov 0.0   ;;  %vm209_vm0 = vmmov 0   ;;  %v53_v2 = vld [vmem:[#allocation5 + $0x10] sm:$0xff]  ;;  %v54_v3 = vld [vmem:[#allocation5 + $0x18] sm:$0xff] }
  0x1d   :  { %146 = vmatprep.subr.bf16.mxu0 %v208_v1  ;;  %150 = vmatprep.mubr.msk.bf16.mxu0 %vm209_vm0, %v208_v1  ;;  %v51_v4 = vld [vmem:[#allocation5] sm:$0xff]  ;;  %v56_v5 = vpack.c.bf16 %v54_v3, %v53_v2  ;;  %v52_v6 = vld [vmem:[#allocation5 + $0x8] sm:$0xff]  ;;  %v49_v8 = vld [vmem:[#allocation3] sm:$0xff]  ;;  %vm64_vm1 = vcmask 261120   ;;  %vm119_vm3 = vcmask 244736   ;;  %vm131_vm4 = vcmask 7168  }
  0x1e   :  { %v55_v7 = vpack.c.bf16 %v52_v6, %v51_v4  ;;  %v50_v9 = vpack.c.bf16 %v49_v8, %v49_v8  ;;  %v139_v10 = vld [vmem:[%s260_s2] ss:$0 sm:$0xff] }
  0x1f   :  { %147 = vmatpush3.bf16.msra.mxu0 %v56_v5  ;;  %v141_v15 = vld [vmem:[%s261_s3] ss:$0 sm:$0xff] }
  0x20   :  { %148 = vmatprep.subr.bf16.mxu0 %v208_v1  ;;  %v142_v21 = vld [vmem:[#allocation2] ss:$0 sm:$0xff] }
  0x23   :  { %149 = vmatpush3.bf16.msra.mxu0 %v55_v7 }
  0x26   :  { %151 = vmatmul.mubr.msk.bf16.vlgmr.msra.gmra.mxu0 %vm64_vm1, %v50_v9 }
  0xe6   :  { %v102_v11 = vpop.f32.mrf.mxu0 }
  0xe7   :  { %v103_v12 = vadd.f32 %v139_v10, %v102_v11 }
  0xe8   :  { %v152_v13 = vpop.f32.mrf.mxu0 }
  0xe9   :  { %v109_v14 = vmul.f32 0.01, %v103_v12  ;;  %vm108_vm2 = vcmp.gt.f32.partialorder %v103_v12, 0.0 }
  0xea   :  { %v105_v16 = vpop.f32.mrf.mxu0 }
  0xeb   :  { %v110_v17 = vsel %vm108_vm2, %v103_v12, %v109_v14 }
  0xec   :  { %v153_v18 = vpop.f32.mrf.mxu0  ;;  %v118_v19 = vmul.f32 %v141_v15, %v110_v17 }
  0xee   :  { %v120_v20 = vsel %vm119_vm3, %v118_v19, 0.0 }
  0xef   :  { %121 = vadd.xlane.f32.xlu0 %v120_v20 }
 0x178   :  { %v122_v22 = vpop.xlane.xlu0 %121 }
 0x179   :  { %v130_v23 = vadd.f32 %v142_v21, %v122_v22 }
 0x17b   :  { %132 = vst.msk [vmem:[%s263_s5] sm:$0xff] %vm131_vm4, %v130_v23 }
 0x17c   :  { %137 = vsyncpa [#allocation4], 1 }
 0x17d   :  { %138 = vsyncpa [#allocation6], 1 }

</bundles_post_ra>
